<compile_context>
chip_gen: v5e
topology: v5e:2x2
jax: 0.10.0
libtpu: 0.0.40
codegen_flags: <defaults>
</compile_context>

<pallas_src>
import jax
import jax.numpy as jnp
from jax.experimental import pallas as pl
from jax.experimental.pallas import tpu as pltpu

IN_F = 10
HID_F = 20
OUT_F = 1


def mlp_kernel(xg_ref, w1_ref, b1_ref, w2_ref, b2_ref, o_ref):
    # xg_ref: (bt, G*10) f32   -- G row-major-packed samples per row
    # w1_ref: (G*10, G*20) bf16 block-diag kron(I_G, W1^T), grid-resident
    # b1_ref: (1, G*20)  f32, grid-resident
    # w2_ref: (G*20, G)  f32 block-diag kron(I_G, W2^T), grid-resident
    # b2_ref: (1, 1)     f32 scalar in SMEM
    # o_ref : (bt, G)    f32
    xb = xg_ref[...].astype(w1_ref.dtype)          # in-VMEM cast, no extra HBM pass
    # fc1 on the MXU (bf16 x bf16 -> f32 accumulate): (bt, G*10) @ (G*10, G*20)
    h = jnp.dot(xb, w1_ref[...], preferred_element_type=jnp.float32)
    # bias + ReLU in f32 (v5e-safe)
    h = jnp.maximum(h + b1_ref[...], 0.0)
    # fc2 stays in f32 (no bf16 re-rounding of h): (bt, G*20) @ (G*20, G)
    y = jnp.dot(h, w2_ref[...], preferred_element_type=jnp.float32)
    o_ref[...] = (y + b2_ref[0, 0]).astype(o_ref.dtype)


def _cdiv(a, b):
    return -(-a // b)


def _round_up(n, m):
    return _cdiv(n, m) * m


def net_forward(x, w1, b1, w2, b2, *, group=16, block_rows=2048):
    """x: (B, 10) f32.  w1: (20, 10), b1: (20,), w2: (1, 20), b2: (1,) —
    PyTorch nn.Linear native (out, in) layout.  Returns (B, 1) f32.

    group (G): samples packed per row (8-16 keeps the kernel HBM-bound on all
    generations).  block_rows: packed rows per grid step; 2048 (=32K samples,
    ~12 MiB VMEM) is safe on v5e/v6e/v7x; v6e can raise toward 8192."""
    B = x.shape[0]
    G = group

    rows = max(1, _cdiv(B, G))                     # packed rows of G samples
    grid_n = max(1, _cdiv(rows, block_rows))       # even tiles -> bounded padding
    bt = _round_up(_cdiv(rows, grid_n), 8)         # sublane-aligned row tile
    rows_pad = bt * grid_n
    b_pad = rows_pad * G

    x = x.astype(jnp.float32)
    if b_pad != B:
        x = jnp.pad(x, ((0, b_pad - B), (0, 0)))
    xg = x.reshape(rows_pad, G * IN_F)             # free row-major reshape (no transpose/cast pass)

    # Tiny block-diagonal weights (built once per call; negligible).
    eye = jnp.eye(G, dtype=jnp.float32)
    w1_blk = jnp.kron(eye, w1.T.astype(jnp.float32)).astype(jnp.bfloat16)   # (G*10, G*20)
    b1_blk = jnp.tile(b1.astype(jnp.float32), G).reshape(1, G * HID_F)      # (1, G*20)
    w2_blk = jnp.kron(eye, w2.T.astype(jnp.float32))                        # (G*20, G) f32
    b2_s = b2.reshape(1, 1).astype(jnp.float32)

    flops = rows_pad * (2 * (G * IN_F) * (G * HID_F) + 2 * (G * HID_F) * G)
    bytes_accessed = (xg.size * 4 + w1_blk.size * 2 + b1_blk.size * 4
                      + w2_blk.size * 4 + 4 + rows_pad * G * 4)

    # Output kept f32 to match the PyTorch module; switch to bf16 here to
    # shave ~8% of kernel traffic if the caller accepts a narrow dtype.
    yg = pl.pallas_call(
        mlp_kernel,
        out_shape=jax.ShapeDtypeStruct((rows_pad, G), jnp.float32),
        grid=(grid_n,),
        in_specs=[
            pl.BlockSpec((bt, G * IN_F), lambda i: (i, 0)),        # packed x tile
            pl.BlockSpec((G * IN_F, G * HID_F), lambda i: (0, 0)),  # W1_blk resident
            pl.BlockSpec((1, G * HID_F), lambda i: (0, 0)),         # b1_blk resident
            pl.BlockSpec((G * HID_F, G), lambda i: (0, 0)),         # W2_blk resident
            pl.BlockSpec(memory_space=pltpu.MemorySpace.SMEM),      # b2 scalar
        ],
        out_specs=pl.BlockSpec((bt, G), lambda i: (i, 0)),
        compiler_params=pltpu.CompilerParams(
            dimension_semantics=("parallel",),          # shard row tiles across TCs
            vmem_limit_bytes=32 * 1024 * 1024,          # <= v7x 64 MiB physical
        ),
        cost_estimate=pl.CostEstimate(
            flops=flops, transcendentals=0, bytes_accessed=bytes_accessed),
    )(xg, w1_blk, b1_blk, w2_blk, b2_s)

    # Free flatten back to per-sample order; drop batch padding.
    return yg.reshape(b_pad)[:B].reshape(B, OUT_F)


def init_params(key):
    # PyTorch nn.Linear default init: U(-1/sqrt(fan_in), 1/sqrt(fan_in)).
    # Weights stored in PyTorch-native (out_features, in_features) layout.
    k1, k2, k3, k4 = jax.random.split(key, 4)
    bound1 = 1.0 / jnp.sqrt(float(IN_F))
    w1 = jax.random.uniform(k1, (HID_F, IN_F), jnp.float32, -bound1, bound1)
    b1 = jax.random.uniform(k2, (HID_F,), jnp.float32, -bound1, bound1)
    bound2 = 1.0 / jnp.sqrt(float(HID_F))
    w2 = jax.random.uniform(k3, (OUT_F, HID_F), jnp.float32, -bound2, bound2)
    b2 = jax.random.uniform(k4, (OUT_F,), jnp.float32, -bound2, bound2)
    return w1, b1, w2, b2


def _reference(x, w1, b1, w2, b2):
    # Pure-JAX reference mirroring the kernel's precision model:
    # x / W1 rounded to bf16, f32 accumulation, fc1->ReLU->fc2 with h and W2 in f32.
    f32 = jnp.float32
    xb = x.astype(jnp.bfloat16).astype(f32)
    w1b = w1.astype(jnp.bfloat16).astype(f32)
    h = jnp.maximum(xb @ w1b.T + b1, 0.0)
    return h @ w2.T + b2


if __name__ == "__main__":
    key = jax.random.PRNGKey(0)
    k_x, k_x2, k_p = jax.random.split(key, 3)
    w1, b1, w2, b2 = init_params(k_p)

    # Small test: single tile (B=8 packs into one 8-row block, grid=1).
    B = 8
    x = jax.random.normal(k_x, (B, IN_F), dtype=jnp.float32)
    out = jax.block_until_ready(net_forward(x, w1, b1, w2, b2))
    ref = _reference(x, w1, b1, w2, b2)
    assert out.shape == (B, OUT_F)
    assert jnp.allclose(out, ref, atol=1e-3, rtol=1e-3), (
        float(jnp.max(jnp.abs(out - ref))))

    # Exercise the multi-tile grid + padding path:
    # B=200 -> 13 packed rows, block_rows=8 -> 2 grid steps of 8 rows.
    B2 = 200
    x2 = jax.random.normal(k_x2, (B2, IN_F), dtype=jnp.float32)
    out2 = jax.block_until_ready(net_forward(x2, w1, b1, w2, b2, block_rows=8))
    ref2 = _reference(x2, w1, b1, w2, b2)
    assert out2.shape == (B2, OUT_F)
    assert jnp.allclose(out2, ref2, atol=1e-3, rtol=1e-3), (
        float(jnp.max(jnp.abs(out2 - ref2))))

    print("KERNEL_OK")
</pallas_src>

<mosaic_0001>
module attributes {stable_mosaic.version = 11 : i64} {
  func.func @mlp_kernel(%arg0: i32, %arg1: memref<8x160xf32, #tpu.memory_space<vmem>>, %arg2: memref<160x320xbf16, #tpu.memory_space<vmem>>, %arg3: memref<1x320xf32, #tpu.memory_space<vmem>>, %arg4: memref<320x16xf32, #tpu.memory_space<vmem>>, %arg5: memref<1x1xf32, #tpu.memory_space<smem>>, %arg6: memref<8x16xf32, #tpu.memory_space<vmem>>) attributes {dimension_semantics = [#tpu.dimension_semantics<parallel>], iteration_bounds = array<i64: 1>, scalar_prefetch = 0 : i64, scratch_operands = 0 : i64, tpu.core_type = #tpu.core_type<tc>, window_params = [{transform_indices = @transform_0, window_bounds = array<i64: 8, 160>}, {pipeline_mode = #tpu.pipeline_mode<synchronous>, transform_indices = @transform_1, window_bounds = array<i64: 160, 320>}, {pipeline_mode = #tpu.pipeline_mode<synchronous>, transform_indices = @transform_2, window_bounds = array<i64: 1, 320>}, {pipeline_mode = #tpu.pipeline_mode<synchronous>, transform_indices = @transform_3, window_bounds = array<i64: 320, 16>}, {transform_indices = @transform_4, window_bounds = array<i64: 1, 1>}, {transform_indices = @transform_5, window_bounds = array<i64: 8, 16>}]} {
    %c0 = arith.constant 0 : index
    %c0_0 = arith.constant 0 : index
    %0 = vector.load %arg1[%c0, %c0_0] : memref<8x160xf32, #tpu.memory_space<vmem>>, vector<8x160xf32>
    %1 = arith.truncf %0 : vector<8x160xf32> to vector<8x160xbf16>
    %c0_1 = arith.constant 0 : index
    %c0_2 = arith.constant 0 : index
    %2 = vector.load %arg2[%c0_1, %c0_2] : memref<160x320xbf16, #tpu.memory_space<vmem>>, vector<160x320xbf16>
    %cst = arith.constant dense<0.000000e+00> : vector<8x320xf32>
    %3 = tpu.matmul %1, %2, %cst {dimension_numbers = #tpu.dot_dimension_numbers<[1], [0], [0], [1], [0, 0, 1, 1], [], []>} : vector<8x160xbf16>, vector<160x320xbf16>, vector<8x320xf32> -> vector<8x320xf32>
    %c0_3 = arith.constant 0 : index
    %c0_4 = arith.constant 0 : index
    %4 = vector.load %arg3[%c0_3, %c0_4] : memref<1x320xf32, #tpu.memory_space<vmem>>, vector<1x320xf32>
    %5 = vector.broadcast %4 : vector<1x320xf32> to vector<8x320xf32>
    %6 = arith.addf %3, %5 : vector<8x320xf32>
    %cst_5 = arith.constant 0.000000e+00 : f32
    %7 = vector.broadcast %cst_5 : f32 to vector<8x320xf32>
    %8 = arith.maximumf %6, %7 : vector<8x320xf32>
    %c0_6 = arith.constant 0 : index
    %c0_7 = arith.constant 0 : index
    %9 = vector.load %arg4[%c0_6, %c0_7] : memref<320x16xf32, #tpu.memory_space<vmem>>, vector<320x16xf32>
    %cst_8 = arith.constant dense<0.000000e+00> : vector<8x16xf32>
    %10 = tpu.matmul %8, %9, %cst_8 {dimension_numbers = #tpu.dot_dimension_numbers<[1], [0], [0], [1], [0, 0, 1, 1], [], []>} : vector<8x320xf32>, vector<320x16xf32>, vector<8x16xf32> -> vector<8x16xf32>
    %c0_9 = arith.constant 0 : index
    %c0_10 = arith.constant 0 : index
    %11 = memref.load %arg5[%c0_9, %c0_10] : memref<1x1xf32, #tpu.memory_space<smem>>
    %12 = vector.broadcast %11 : f32 to vector<8x16xf32>
    %13 = arith.addf %10, %12 : vector<8x16xf32>
    %c0_11 = arith.constant 0 : index
    %c0_12 = arith.constant 0 : index
    %14 = vector.load %arg6[%c0_11, %c0_12] : memref<8x16xf32, #tpu.memory_space<vmem>>, vector<8x16xf32>
    tpu.vector_store %arg6[%c0_11, %c0_12], %13 {strides = array<i32>} : memref<8x16xf32, #tpu.memory_space<vmem>>, vector<8x16xf32>,
    return
  }
  func.func @transform_0(%arg0: i32) -> (i32, i32) {
    %c0_i32 = arith.constant 0 : i32
    %c0_i32_0 = arith.constant 0 : i32
    return %arg0, %c0_i32 : i32, i32
  }
  func.func @transform_1(%arg0: i32) -> (i32, i32) {
    %c0_i32 = arith.constant 0 : i32
    %c0_i32_0 = arith.constant 0 : i32
    %c0_i32_1 = arith.constant 0 : i32
    return %c0_i32, %c0_i32_0 : i32, i32
  }
  func.func @transform_2(%arg0: i32) -> (i32, i32) {
    %c0_i32 = arith.constant 0 : i32
    %c0_i32_0 = arith.constant 0 : i32
    %c0_i32_1 = arith.constant 0 : i32
    return %c0_i32, %c0_i32_0 : i32, i32
  }
  func.func @transform_3(%arg0: i32) -> (i32, i32) {
    %c0_i32 = arith.constant 0 : i32
    %c0_i32_0 = arith.constant 0 : i32
    %c0_i32_1 = arith.constant 0 : i32
    return %c0_i32, %c0_i32_0 : i32, i32
  }
  func.func @transform_4(%arg0: i32) -> (i32, i32) {
    %c0_i32 = arith.constant 0 : i32
    %c0_i32_0 = arith.constant 0 : i32
    %c0_i32_1 = arith.constant 0 : i32
    return %c0_i32, %c0_i32_0 : i32, i32
  }
  func.func @transform_5(%arg0: i32) -> (i32, i32) {
    %c0_i32 = arith.constant 0 : i32
    %c0_i32_0 = arith.constant 0 : i32
    return %arg0, %c0_i32 : i32, i32
  }
}

</mosaic_0001>

<bundles_post_ra>
// kernel: tpu_custom_call.1
= control target key start
LH: loop header
LB: loop body
LE: loop exit
PB: predicated region body
PF: predicated region fallthrough
CT: control target
= control target key end

     0   :  { %vm235_vm0 = vcmask 261120   ;;  %s979_s0 = inlined_call_operand.vmem [shape: f32[8,160], index: 0, kind: input, shape index: {}]   ;;  %s980_s1 = inlined_call_operand.vmem [shape: bf16[160,320], index: 1, kind: input, shape index: {}]   ;;  %s981_s2 = inlined_call_operand.vmem [shape: f32[1,320], index: 2, kind: input, shape index: {}]   ;;  %s982_s3 = inlined_call_operand.vmem [shape: f32[320,16], index: 3, kind: input, shape index: {}]   ;;  %s983_s4 = inlined_call_operand.<no memory space> [shape: f32[1,1], index: 4, kind: input, shape index: {}]   ;;  %s984_s5 = inlined_call_operand.hbm [shape: f32[8,16], index: 5, kind: output, shape index: {}]  }
   0x1   :  { %v530_v0 = vld [vmem:[%s980_s1 + $0xa8] sm:$0xf]  ;;  %v590_v1 = vld [vmem:[%s980_s1 + $0xb0] sm:$0xf0]  ;;  %v554_v2 = vld [vmem:[%s980_s1 + $0xd8] sm:$0xf] }
   0x2   :  { %v531_v3 = vor.u32 %v590_v1, %v530_v0  ;;  %v596_v4 = vld [vmem:[%s980_s1 + $0xe0] sm:$0xf0]  ;;  %v589_v5 = vld [vmem:[%s980_s1 + $0xac] sm:$0xf]  ;;  %v532_v6 = vld [vmem:[%s980_s1 + $0xb4] sm:$0xf0] }
   0x3   :  { %v555_v7 = vor.u32 %v596_v4, %v554_v2  ;;  %v535_v8 = vor.u32 %v589_v5, %v532_v6  ;;  %v595_v9 = vld [vmem:[%s980_s1 + $0xdc] sm:$0xf]  ;;  %v556_v10 = vld [vmem:[%s980_s1 + $0xe4] sm:$0xf0]  ;;  %v518_v11 = vld [vmem:[%s980_s1 + $0x90] sm:$0xf] }
   0x4   :  { %239 = vmatpush.bf16.msra.mxu0 %v531_v3  ;;  %v559_v12 = vor.u32 %v595_v9, %v556_v10  ;;  %v587_v13 = vld [vmem:[%s980_s1 + $0x98] sm:$0xf0]  ;;  %v542_v14 = vld [vmem:[%s980_s1 + $0xc0] sm:$0xf]  ;;  %v593_v15 = vld [vmem:[%s980_s1 + $0xc8] sm:$0xf0] }
   0x5   :  { %258 = vmatpush.bf16.msra.mxu1 %v555_v7  ;;  %265 = vmatpush.bf16.msra.mxu2 %v535_v8  ;;  %v519_v16 = vor.u32 %v587_v13, %v518_v11  ;;  %v543_v17 = vor.u32 %v593_v15, %v542_v14  ;;  %v586_v18 = vld [vmem:[%s980_s1 + $0x94] sm:$0xf]  ;;  %v520_v19 = vld [vmem:[%s980_s1 + $0x9c] sm:$0xf0]  ;;  %v592_v20 = vld [vmem:[%s980_s1 + $0xc4] sm:$0xf] }
   0x6   :  { %284 = vmatpush.bf16.msra.mxu3 %v559_v12  ;;  %v523_v21 = vor.u32 %v586_v18, %v520_v19  ;;  %v544_v22 = vld [vmem:[%s980_s1 + $0xcc] sm:$0xf0]  ;;  %v591_v24 = vld [vmem:[%s980_s1 + $0xb8] sm:$0xf0]  ;;  %v506_v27 = vld [vmem:[%s980_s1 + $0x78] sm:$0xf] }
   0x7   :  { %v538_v23 = vld [vmem:[%s980_s1 + $0xb0] sm:$0xf]  ;;  %v547_v25 = vor.u32 %v592_v20, %v544_v22  ;;  %v584_v28 = vld [vmem:[%s980_s1 + $0x80] sm:$0xf0]  ;;  %v583_v29 = vld [vmem:[%s980_s1 + $0x7c] sm:$0xf] }
   0x8   :  { %v539_v26 = vor.u32 %v591_v24, %v538_v23  ;;  %240 = vmatpush.bf16.msra.mxu0 %v519_v16  ;;  %v507_v30 = vor.u32 %v584_v28, %v506_v27  ;;  %v508_v31 = vld [vmem:[%s980_s1 + $0x84] sm:$0xf0]  ;;  %v526_v33 = vld [vmem:[%s980_s1 + $0x98] sm:$0xf]  ;;  %v588_v36 = vld [vmem:[%s980_s1 + $0xa0] sm:$0xf0] }
   0x9   :  { %v24_v32 = vld [vmem:[%s979_s0 + $0x8] sm:$0xff]  ;;  %259 = vmatpush.bf16.msra.mxu1 %v543_v17  ;;  %266 = vmatpush.bf16.msra.mxu2 %v523_v21  ;;  %v511_v34 = vor.u32 %v583_v29, %v508_v31  ;;  %v494_v37 = vld [vmem:[%s980_s1 + $0x60] sm:$0xf]  ;;  %v527_v39 = vor.u32 %v588_v36, %v526_v33  ;;  %v580_v40 = vld [vmem:[%s980_s1 + $0x64] sm:$0xf] }
   0xa   :  { %v728_v35 = vpack.c.bf16 %v24_v32, %v24_v32  ;;  %v581_v38 = vld [vmem:[%s980_s1 + $0x68] sm:$0xf0]  ;;  %285 = vmatpush.bf16.msra.mxu3 %v547_v25  ;;  %v496_v41 = vld [vmem:[%s980_s1 + $0x6c] sm:$0xf0]  ;;  %v514_v42 = vld [vmem:[%s980_s1 + $0x80] sm:$0xf] }
   0xb   :  { %v585_v43 = vld [vmem:[%s980_s1 + $0x88] sm:$0xf0]  ;;  %v495_v44 = vor.u32 %v581_v38, %v494_v37  ;;  %v562_v45 = vld [vmem:[%s980_s1 + $0xe0] sm:$0xf]  ;;  %v499_v46 = vor.u32 %v580_v40, %v496_v41  ;;  %v482_v47 = vld [vmem:[%s980_s1 + $0x48] sm:$0xf] }
   0xc   :  { %241 = vmatpush.bf16.msra.mxu0 %v507_v30  ;;  %564 = vmatmul.msk.bf16.vlgmr.msra.gmra.mxu1 %vm235_vm0, %v728_v35  ;;  %v578_v48 = vld [vmem:[%s980_s1 + $0x50] sm:$0xf0]  ;;  %v597_v49 = vld [vmem:[%s980_s1 + $0xe8] sm:$0xf0]  ;;  %v515_v50 = vor.u32 %v585_v43, %v514_v42  ;;  %v484_v52 = vld [vmem:[%s980_s1 + $0x54] sm:$0xf0] }
   0xd   :  { %291 = vmatpush.bf16.msrb.mxu1 %v539_v26  ;;  %267 = vmatpush.bf16.msra.mxu2 %v511_v34  ;;  %v577_v51 = vld [vmem:[%s980_s1 + $0x4c] sm:$0xf]  ;;  %v563_v53 = vor.u32 %v597_v49, %v562_v45  ;;  %v502_v54 = vld [vmem:[%s980_s1 + $0x68] sm:$0xf]  ;;  %v582_v55 = vld [vmem:[%s980_s1 + $0x70] sm:$0xf0]  ;;  %v483_v56 = vor.u32 %v578_v48, %v482_v47 }
   0xe   :  { %565 = vmatmul.msk.bf16.vlgmr.msra.gmra.mxu3 %vm235_vm0, %v728_v35  ;;  %v550_v57 = vld [vmem:[%s980_s1 + $0xc8] sm:$0xf]  ;;  %v594_v58 = vld [vmem:[%s980_s1 + $0xd0] sm:$0xf0]  ;;  %v487_v59 = vor.u32 %v577_v51, %v484_v52  ;;  %v470_v60 = vld [vmem:[%s980_s1 + $0x30] sm:$0xf]  ;;  %v503_v63 = vor.u32 %v582_v55, %v502_v54 }
   0xf   :  { %310 = vmatpush.bf16.msrb.mxu3 %v563_v53  ;;  %v575_v61 = vld [vmem:[%s980_s1 + $0x38] sm:$0xf0]  ;;  %v551_v62 = vor.u32 %v594_v58, %v550_v57  ;;  %v574_v0 = vld [vmem:[%s980_s1 + $0x34] sm:$0xf]  ;;  %v472_v1 = vld [vmem:[%s980_s1 + $0x3c] sm:$0xf0] }
  0x10   :  { %242 = vmatpush.bf16.msra.mxu0 %v495_v44  ;;  %v490_v2 = vld [vmem:[%s980_s1 + $0x50] sm:$0xf]  ;;  %v579_v3 = vld [vmem:[%s980_s1 + $0x58] sm:$0xf0]  ;;  %v471_v4 = vor.u32 %v575_v61, %v470_v60  ;;  %v458_v5 = vld [vmem:[%s980_s1 + $0x18] sm:$0xf]  ;;  %v475_v6 = vor.u32 %v574_v0, %v472_v1 }
  0x11   :  { %292 = vmatpush.bf16.msrb.mxu1 %v527_v39  ;;  %268 = vmatpush.bf16.msra.mxu2 %v499_v46  ;;  %v572_v7 = vld [vmem:[%s980_s1 + $0x20] sm:$0xf0]  ;;  %v571_v8 = vld [vmem:[%s980_s1 + $0x1c] sm:$0xf]  ;;  %v491_v10 = vor.u32 %v579_v3, %v490_v2  ;;  %v460_v11 = vld [vmem:[%s980_s1 + $0x24] sm:$0xf0] }
  0x12   :  { %v335_v9 = vld [vmem:[%s982_s3 + $0x78] sm:$0xff]  ;;  %v334_v12 = vld [vmem:[%s982_s3 + $0x70] sm:$0xff] }
  0x13   :  { %311 = vmatpush.bf16.msrb.mxu3 %v551_v62 }
  0x14   :  { %243 = vmatpush.bf16.msra.mxu0 %v483_v56 }
  0x15   :  { %293 = vmatpush.bf16.msrb.mxu1 %v515_v50  ;;  %269 = vmatpush.bf16.msra.mxu2 %v487_v59 }
  0x17   :  { %366 = vmatpush.msra.mxu3 %v335_v9 }
  0x19   :  { %294 = vmatpush.bf16.msrb.mxu1 %v503_v63 }
  0x1a   :  { %11 = vsyncpa [#allocation4], 0  ;;  %v478_v13 = vld [vmem:[%s980_s1 + $0x38] sm:$0xf]  ;;  %v576_v14 = vld [vmem:[%s980_s1 + $0x40] sm:$0xf0]  ;;  %244 = vmatpush.bf16.msra.mxu0 %v471_v4  ;;  %v459_v16 = vor.u32 %v572_v7, %v458_v5  ;;  %367 = vmatpush.msra.mxu3 %v334_v12  ;;  %v463_v17 = vor.u32 %v571_v8, %v460_v11 }
  0x1b   :  { %v333_v15 = vld [vmem:[%s982_s3 + $0x68] sm:$0xff]  ;;  %270 = vmatpush.bf16.msra.mxu2 %v475_v6  ;;  %v446_v18 = vld [vmem:[%s980_s1] sm:$0xf]  ;;  %v479_v20 = vor.u32 %v576_v14, %v478_v13  ;;  %v568_v21 = vld [vmem:[%s980_s1 + $0x4] sm:$0xf]  ;;  %vm362_vm1 = vcmask 523264  }
  0x1c   :  { %v569_v19 = vld [vmem:[%s980_s1 + $0x8] sm:$0xf0]  ;;  %v448_v22 = vld [vmem:[%s980_s1 + $0xc] sm:$0xf0]  ;;  %368 = vmatpush.msra.mxu3 %v333_v15  ;;  %v466_v23 = vld [vmem:[%s980_s1 + $0x20] sm:$0xf] }
  0x1d   :  { %295 = vmatpush.bf16.msrb.mxu1 %v491_v10  ;;  %v573_v24 = vld [vmem:[%s980_s1 + $0x28] sm:$0xf0]  ;;  %v447_v25 = vor.u32 %v569_v19, %v446_v18  ;;  %v23_v26 = vld [vmem:[%s979_s0] sm:$0xff]  ;;  %v451_v27 = vor.u32 %v568_v21, %v448_v22  ;;  %v454_v30 = vld [vmem:[%s980_s1 + $0x8] sm:$0xf]  ;;  %s625_s18 = smov [#allocation3]  }
  0x1e   :  { %245 = vmatpush.bf16.msra.mxu0 %v459_v16  ;;  %566 = vmatmul.msk.bf16.vlgmr.msrb.gmra.mxu3 %vm235_vm0, %v728_v35  ;;  %v467_v28 = vor.u32 %v573_v24, %v466_v23  ;;  %v25_v29 = vpack.c.bf16 %v23_v26, %v23_v26  ;;  %v570_v31 = vld [vmem:[%s980_s1 + $0x10] sm:$0xf0]  ;;  %v332_v33 = vld [vmem:[%s982_s3 + $0x60] sm:$0xff]  ;;  %v351_v34 = vld [vmem:[%s982_s3 + $0xf8] sm:$0xff]  ;;  %s433_s19 = sshll.u32 %s625_s18, 4  ;;  %s435_s22 = sshll.u32 %s984_s5, 4  ;;  %s434_s19 = int_to_ptr.vmem [resolvable:$true] %s433_s19  ;;  %s436_s22 = int_to_ptr.hbm [resolvable:$true] %s435_s22 }
  0x1f   :  { %271 = vmatpush.bf16.msra.mxu2 %v463_v17  ;;  %v455_v32 = vor.u32 %v570_v31, %v454_v30  ;;  %369 = vmatpush.msra.mxu3 %v332_v33  ;;  %v331_v35 = vld [vmem:[%s982_s3 + $0x58] sm:$0xff]  ;;  %v350_v36 = vld [vmem:[%s982_s3 + $0xf0] sm:$0xff]  ;;  %v349_v38 = vld [vmem:[%s982_s3 + $0xe8] sm:$0xff]  ;;  %v361_v31 = vstv %s983_s4  ;;  %vm426_vm2 = vcmask 130048  }
  0x20   :  { %v330_v37 = vld [vmem:[%s982_s3 + $0x50] sm:$0xff]  ;;  %v329_v39 = vld [vmem:[%s982_s3 + $0x48] sm:$0xff]  ;;  %v348_v40 = vld [vmem:[%s982_s3 + $0xe0] sm:$0xff] }
  0x21   :  { %296 = vmatpush.bf16.msrb.mxu1 %v479_v20  ;;  %370 = vmatpush.msra.mxu3 %v331_v35  ;;  %v328_v41 = vld [vmem:[%s982_s3 + $0x40] sm:$0xff]  ;;  %v347_v42 = vld [vmem:[%s982_s3 + $0xd8] sm:$0xff]  ;;  %v346_v44 = vld [vmem:[%s982_s3 + $0xd0] sm:$0xff] }
  0x22   :  { %246 = vmatpush.bf16.msra.mxu0 %v447_v25  ;;  %v327_v43 = vld [vmem:[%s982_s3 + $0x38] sm:$0xff]  ;;  %v326_v45 = vld [vmem:[%s982_s3 + $0x30] sm:$0xff]  ;;  %v345_v46 = vld [vmem:[%s982_s3 + $0xc8] sm:$0xff] }
  0x23   :  { %272 = vmatpush.bf16.msra.mxu2 %v451_v27  ;;  %371 = vmatpush.msra.mxu3 %v330_v37  ;;  %v325_v47 = vld [vmem:[%s982_s3 + $0x28] sm:$0xff]  ;;  %v344_v48 = vld [vmem:[%s982_s3 + $0xc0] sm:$0xff]  ;;  %v359_v49 = vld [vmem:[%s982_s3 + $0x138] sm:$0xff] }
  0x24   :  { %v358_v50 = vld [vmem:[%s982_s3 + $0x130] sm:$0xff]  ;;  %v324_v51 = vld [vmem:[%s982_s3 + $0x20] sm:$0xff]  ;;  %v343_v52 = vld [vmem:[%s982_s3 + $0xb8] sm:$0xff] }
  0x25   :  { %297 = vmatpush.bf16.msrb.mxu1 %v467_v28  ;;  %247 = vmatmul.bf16.vlgmr.msra.gmra.mxu0 %v25_v29  ;;  %v323_v53 = vld [vmem:[%s982_s3 + $0x18] sm:$0xff]  ;;  %v342_v54 = vld [vmem:[%s982_s3 + $0xb0] sm:$0xff]  ;;  %v357_v55 = vld [vmem:[%s982_s3 + $0x128] sm:$0xff] }
  0x26   :  { %273 = vmatmul.bf16.vlgmr.msra.gmra.mxu2 %v25_v29  ;;  %386 = vmatpush.msrb.mxu0 %v351_v34  ;;  %v322_v56 = vld [vmem:[%s982_s3 + $0x10] sm:$0xff]  ;;  %v341_v57 = vld [vmem:[%s982_s3 + $0xa8] sm:$0xff]  ;;  %v356_v58 = vld [vmem:[%s982_s3 + $0x120] sm:$0xff] }
  0x27   :  { %372 = vmatpush.msra.mxu3 %v329_v39  ;;  %414 = vmatpush.msrb.mxu2 %v359_v49  ;;  %v321_v59 = vld [vmem:[%s982_s3 + $0x8] sm:$0xff]  ;;  %v340_v60 = vld [vmem:[%s982_s3 + $0xa0] sm:$0xff]  ;;  %v355_v61 = vld [vmem:[%s982_s3 + $0x118] sm:$0xff] }
  0x28   :  { %387 = vmatpush.msrb.mxu0 %v350_v36  ;;  %v320_v62 = vld [vmem:[%s982_s3] sm:$0xff]  ;;  %v339_v63 = vld [vmem:[%s982_s3 + $0x98] sm:$0xff]  ;;  %v354_v0 = vld [vmem:[%s982_s3 + $0x110] sm:$0xff] }
  0x29   :  { %298 = vmatpush.bf16.msrb.mxu1 %v455_v32  ;;  %373 = vmatpush.msra.mxu3 %v328_v41  ;;  %v338_v1 = vld [vmem:[%s982_s3 + $0x90] sm:$0xff]  ;;  %v353_v3 = vld [vmem:[%s982_s3 + $0x108] sm:$0xff]  ;;  %v352_v5 = vld [vmem:[%s982_s3 + $0x100] sm:$0xff] }
  0x2a   :  { %388 = vmatpush.msrb.mxu0 %v349_v38  ;;  %415 = vmatpush.msrb.mxu2 %v358_v50  ;;  %v337_v4 = vld [vmem:[%s982_s3 + $0x88] sm:$0xff]  ;;  %v336_v6 = vld [vmem:[%s982_s3 + $0x80] sm:$0xff] }
  0x2b   :  { %374 = vmatpush.msra.mxu3 %v327_v43  ;;  %v67_v10 = vld [vmem:[%s981_s2] sm:$0x7] }
  0x2c   :  { %299 = vmatmul.bf16.vlgmr.msrb.gmra.mxu1 %v25_v29  ;;  %389 = vmatpush.msrb.mxu0 %v348_v40  ;;  %v69_v11 = vperm.slane %v67_v10, 0  ;;  %v71_v16 = vperm.slane %v67_v10, 2  ;;  %v70_v17 = vperm.slane %v67_v10, 1 }
  0x2d   :  { %375 = vmatpush.msra.mxu3 %v326_v45  ;;  %416 = vmatpush.msrb.mxu2 %v357_v55 }
  0x2e   :  { %390 = vmatpush.msrb.mxu0 %v347_v42 }
  0x2f   :  { %376 = vmatpush.msra.mxu3 %v325_v47  ;;  %417 = vmatpush.msrb.mxu2 %v356_v58 }
  0x30   :  { %391 = vmatpush.msrb.mxu0 %v346_v44 }
  0x31   :  { %377 = vmatpush.msra.mxu3 %v324_v51  ;;  %418 = vmatpush.msrb.mxu2 %v355_v61 }
  0x32   :  { %392 = vmatpush.msrb.mxu0 %v345_v46 }
  0x33   :  { %378 = vmatpush.msra.mxu3 %v323_v53  ;;  %419 = vmatpush.msrb.mxu2 %v354_v0 }
  0x34   :  { %393 = vmatpush.msrb.mxu0 %v344_v48 }
  0x35   :  { %379 = vmatpush.msra.mxu3 %v322_v56  ;;  %420 = vmatpush.msrb.mxu2 %v353_v3 }
  0x36   :  { %394 = vmatpush.msrb.mxu0 %v343_v52 }
  0x37   :  { %380 = vmatpush.msra.mxu3 %v321_v59  ;;  %421 = vmatpush.msrb.mxu2 %v352_v5 }
  0x38   :  { %395 = vmatpush.msrb.mxu0 %v342_v54 }
  0x39   :  { %381 = vmatpush.msra.mxu3 %v320_v62 }
  0x3a   :  { %396 = vmatpush.msrb.mxu0 %v341_v57 }
  0x3c   :  { %397 = vmatpush.msrb.mxu0 %v340_v60 }
  0x3e   :  { %398 = vmatpush.msrb.mxu0 %v339_v63 }
  0x40   :  { %399 = vmatpush.msrb.mxu0 %v338_v1 }
  0x42   :  { %400 = vmatpush.msrb.mxu0 %v337_v4 }
  0x44   :  { %401 = vmatpush.msrb.mxu0 %v336_v6 }
  0x89   :  { %v261_v2 = vpop.f32.mrf.mxu1 }
  0x91   :  { %v287_v7 = vpop.f32.mrf.mxu3  ;;  %v263_v8 = vpop.f32.mrf.mxu1 }
  0x99   :  { %v289_v9 = vpop.f32.mrf.mxu3 }
  0xa1   :  { %v313_v12 = vpop.f32.mrf.mxu3 }
  0xa2   :  { %v248_v13 = vpop.f32.mrf.mxu0 }
  0xa3   :  { %v249_v14 = vadd.f32 %v248_v13, %v69_v11 }
  0xa5   :  { %v262_v15 = vadd.f32 %v261_v2, %v249_v14 }
  0xa7   :  { %v317_v18 = vmax.f32 %v262_v15, 0.0 }
  0xa9   :  { %v300_v19 = vpop.f32.mrf.mxu1  ;;  %v274_v21 = vpop.f32.mrf.mxu2  ;;  %382 = vmatmul.f32.vlgmr.msra.gmra.mxu3 %v317_v18 }
  0xaa   :  { %v301_v20 = vadd.f32 %v300_v19, %v71_v16  ;;  %v275_v22 = vadd.f32 %v274_v21, %v70_v17  ;;  %v315_v23 = vpop.f32.mrf.mxu3  ;;  %v250_v24 = vpop.f32.mrf.mxu0 }
  0xac   :  { %v314_v25 = vadd.f32 %v313_v12, %v301_v20  ;;  %v288_v26 = vadd.f32 %v287_v7, %v275_v22 }
  0xae   :  { %v319_v27 = vmax.f32 %v314_v25, 0.0  ;;  %v318_v28 = vmax.f32 %v288_v26, 0.0 }
  0xb0   :  { %567 = vmatmul.msk.f32.vlgmr.msrb.gmra.mxu2 %vm362_vm1, %v319_v27  ;;  %402 = vmatmul.f32.vlgmr.msrb.gmra.mxu0 %v318_v28 }
  0xb1   :  { %v302_v29 = vpop.f32.mrf.mxu1  ;;  %v276_v30 = vpop.f32.mrf.mxu2 }
 0x12c   :  { %v383_v32 = vpop.f32.mrf.mxu3 }
 0x12d   :  { %v384_v33 = vadd.f32 %v383_v32, %v361_v31  ;;  %v403_v34 = vpop.f32.mrf.mxu0 }
 0x12f   :  { %v404_v35 = vadd.f32 %v403_v34, %v384_v33 }
 0x133   :  { %v423_v36 = vpop.f32.mrf.mxu2 }
 0x134   :  { %v424_v37 = vadd.f32 %v423_v36, %v404_v35 }
 0x136   :  { %427 = vst.msk [vmem:[#allocation3] sm:$0xff] %vm426_vm2, %v424_v37 }
 0x137   :  { %438 = dma.vmem_to_hbm [thread:$0]  %s434_s19, 128, %s436_s22, [#allocation4]  }
 0x138   :  { %623 = dma.done.wait [#allocation4], 128  }
 0x139   :  { %624 = vsyncadd [#allocation4], 4294967168 }
 0x13a   :  { %443 = vsyncpa [#allocation4], 1 }

</bundles_post_ra>
